<compile_context>
chip_gen: v5e
topology: v5e:2x2
jax: 0.10.0
libtpu: 0.0.40
codegen_flags: <defaults>
</compile_context>

<pallas_src>
import jax
import jax.numpy as jnp
from jax.experimental import pallas as pl
from jax.experimental.pallas import tpu as pltpu


def _round_up(n, m):
    return ((n + m - 1) // m) * m


def mlp_kernel(x_ref, w1_ref, b1_ref, w2_ref, b2_ref, o_ref):
    c = o_ref.shape[-1]
    # fc1: (TB, Kp)f32 -> bf16 @ (Kp, Hp)bf16 -> f32 acc, + bias, ReLU (f32).
    h = jnp.dot(x_ref[...].astype(jnp.bfloat16), w1_ref[...],
                preferred_element_type=jnp.float32)
    h = jnp.maximum(h + b1_ref[...], 0.0)
    # dropout: identity in inference mode.
    # TODO(synk): training-mode dropout (pltpu.prng_random_bits mask) not implemented.
    # fc2: (TB, Hp)bf16 @ (Hp, Cp)bf16 -> f32 acc, + bias, ReLU.
    y = jnp.dot(h.astype(jnp.bfloat16), w2_ref[...],
                preferred_element_type=jnp.float32)
    y = jnp.maximum(y + b2_ref[...], 0.0)
    # Store only the real num_class columns (un-padded output stream).
    o_ref[...] = y[:, :c].astype(o_ref.dtype)


def prepare_mlp_params(w1, b1, w2, b2):
    """One-time (init-time) padding + bf16 cast of the MLP parameters.

    Hoisted out of the forward hot path.  Zero padding is numerically exact:
    padded K rows of w1 see zero x cols, padded hidden units are ReLU(0)=0 and
    hit zero rows of w2, padded class cols are never stored.
    """
    K, H = w1.shape
    C = w2.shape[1]
    Kp, Hp, Cp = _round_up(K, 128), _round_up(H, 128), _round_up(C, 128)

    w1_p = jnp.pad(jnp.asarray(w1, jnp.bfloat16), ((0, Kp - K), (0, Hp - H)))
    b1_p = jnp.pad(jnp.asarray(b1, jnp.float32).reshape(1, H), ((0, 0), (0, Hp - H)))
    w2_p = jnp.pad(jnp.asarray(w2, jnp.bfloat16), ((0, Hp - H), (0, Cp - C)))
    b2_p = jnp.pad(jnp.asarray(b2, jnp.float32).reshape(1, C), ((0, 0), (0, Cp - C)))

    return {"w1": w1_p, "b1": b1_p, "w2": w2_p, "b2": b2_p,
            "K": K, "H": H, "C": C}


def mlp_forward(x, params, *, block_b=512):
    """x: (B, L, E) f32.  params: output of prepare_mlp_params.
    Returns (B, C) f32 = ReLU(ReLU(flatten(x) @ w1 + b1) @ w2 + b2)."""
    B = x.shape[0]
    K, C = params["K"], params["C"]
    w1_p, b1_p, w2_p, b2_p = params["w1"], params["b1"], params["w2"], params["b2"]
    Kp, Hp = w1_p.shape
    Cp = w2_p.shape[1]

    x_flat = x.reshape(B, -1).astype(jnp.float32)   # row-major, same as torch .view
    assert x_flat.shape[1] == K, (x_flat.shape, K)

    # --- Batch tiling.  Largest tile <= block_b, but keep >= 2 grid steps so
    # the "parallel" axis gives both v7x TensorCores work (e.g. B=256 -> TB=128,
    # grid=(2,)).  v5e/v6e run the grid sequentially; bigger tiles amortize the
    # ~0.35 us per-step overhead.
    Bp8 = _round_up(B, 8)
    TB = min(_round_up(block_b, 8), Bp8)
    if Bp8 // TB < 2 and Bp8 >= 16:
        TB = _round_up((Bp8 + 1) // 2, 8)
    Bp = _round_up(B, TB)
    n_b = Bp // TB

    # --- Hot path: no extra pad/cast pass over x (kernel casts f32 -> bf16).
    if (K % 128 == 0) and (B % TB == 0):
        x_in = x_flat                                  # (Bp, Kp) == (B, K)
    else:
        # Slow path: K or batch needs zero padding (exact, rows sliced below).
        x_in = jnp.zeros((Bp, Kp), jnp.float32).at[:B, :K].set(x_flat)

    cost = pl.CostEstimate(
        flops=2 * Bp * Kp * Hp + 2 * Bp * Hp * Cp,
        transcendentals=0,
        bytes_accessed=(Bp * Kp * 4            # x, read once as f32
                        + Kp * Hp * 2 + Hp * Cp * 2   # bf16 weights
                        + Hp * 4 + Cp * 4             # f32 biases
                        + Bp * C * 4),                # un-padded f32 output
    )

    out_p = pl.pallas_call(
        mlp_kernel,
        out_shape=jax.ShapeDtypeStruct((Bp, C), jnp.float32),
        grid_spec=pltpu.PrefetchScalarGridSpec(
            num_scalar_prefetch=0,
            grid=(n_b,),
            in_specs=[
                # x tile marches over the batch (double-buffered by default).
                pl.BlockSpec((TB, Kp), lambda i: (i, 0)),
                # Invariant weights/biases: VMEM-resident, single-buffered.
                pl.BlockSpec((Kp, Hp), lambda i: (0, 0),
                             pipeline_mode=pl.Buffered(1)),
                pl.BlockSpec((1, Hp), lambda i: (0, 0),
                             pipeline_mode=pl.Buffered(1)),
                pl.BlockSpec((Hp, Cp), lambda i: (0, 0),
                             pipeline_mode=pl.Buffered(1)),
                pl.BlockSpec((1, Cp), lambda i: (0, 0),
                             pipeline_mode=pl.Buffered(1)),
            ],
            # Un-padded output block: last dim == full array dim (= C).
            out_specs=pl.BlockSpec((TB, C), lambda i: (i, 0)),
        ),
        compiler_params=pltpu.CompilerParams(
            dimension_semantics=("parallel",),
            vmem_limit_bytes=48 * 1024 * 1024,   # headroom under v7x's 64 MiB
        ),
        cost_estimate=cost,
    )(x_in, w1_p, b1_p, w2_p, b2_p)

    return out_p[:B] if Bp != B else out_p


if __name__ == "__main__":
    # Small shapes consistent with the module's forward:
    # batch=256, max_text_len=16, embedding_size=8, hidden_size=16, num_class=2
    # -> K = 128 (multiple of 128) and B % TB == 0, so the no-copy fast path
    #    and a (2,) parallel grid are both exercised.
    B, L, E = 256, 16, 8
    H, C = 16, 2
    K = L * E

    key = jax.random.PRNGKey(0)
    kx, kw1, kb1, kw2, kb2 = jax.random.split(key, 5)

    x = jax.random.normal(kx, (B, L, E), dtype=jnp.float32)
    # Deterministic parameter init (PyTorch-Linear-like uniform bounds).
    lim1 = 1.0 / (K ** 0.5)
    lim2 = 1.0 / (H ** 0.5)
    w1 = jax.random.uniform(kw1, (K, H), jnp.float32, -lim1, lim1)
    b1 = jax.random.uniform(kb1, (H,), jnp.float32, -lim1, lim1)
    w2 = jax.random.uniform(kw2, (H, C), jnp.float32, -lim2, lim2)
    b2 = jax.random.uniform(kb2, (C,), jnp.float32, -lim2, lim2)

    # One-time parameter prep (padding + bf16 cast), off the hot path.
    params = prepare_mlp_params(w1, b1, w2, b2)

    out = jax.block_until_ready(mlp_forward(x, params))

    # Reference in plain JAX (inference-mode dropout == identity).
    # bf16 MXU inputs (f32 accumulation) -> looser tolerance than pure f32;
    # this is an intentional numerics change.
    xf = x.reshape(B, -1)
    ref = jnp.maximum(jnp.maximum(xf @ w1 + b1, 0.0) @ w2 + b2, 0.0)
    assert out.shape == (B, C), out.shape
    assert jnp.allclose(out, ref, atol=2e-2, rtol=2e-2), float(jnp.max(jnp.abs(out - ref)))

    print("KERNEL_OK")
</pallas_src>

<mosaic_0001>
module attributes {stable_mosaic.version = 11 : i64} {
  func.func @mlp_kernel(%arg0: i32, %arg1: memref<128x128xf32, #tpu.memory_space<vmem>>, %arg2: memref<128x128xbf16, #tpu.memory_space<vmem>>, %arg3: memref<1x128xf32, #tpu.memory_space<vmem>>, %arg4: memref<128x128xbf16, #tpu.memory_space<vmem>>, %arg5: memref<1x128xf32, #tpu.memory_space<vmem>>, %arg6: memref<128x2xf32, #tpu.memory_space<vmem>>) attributes {dimension_semantics = [#tpu.dimension_semantics<parallel>], iteration_bounds = array<i64: 2>, scalar_prefetch = 0 : i64, scratch_operands = 0 : i64, tpu.core_type = #tpu.core_type<tc>, window_params = [{transform_indices = @transform_0, window_bounds = array<i64: 128, 128>}, {pipeline_mode = #tpu.pipeline_mode<synchronous>, transform_indices = @transform_1, window_bounds = array<i64: 128, 128>}, {pipeline_mode = #tpu.pipeline_mode<synchronous>, transform_indices = @transform_2, window_bounds = array<i64: 1, 128>}, {pipeline_mode = #tpu.pipeline_mode<synchronous>, transform_indices = @transform_3, window_bounds = array<i64: 128, 128>}, {pipeline_mode = #tpu.pipeline_mode<synchronous>, transform_indices = @transform_4, window_bounds = array<i64: 1, 128>}, {transform_indices = @transform_5, window_bounds = array<i64: 128, 2>}]} {
    %c0 = arith.constant 0 : index
    %c0_0 = arith.constant 0 : index
    %0 = vector.load %arg1[%c0, %c0_0] : memref<128x128xf32, #tpu.memory_space<vmem>>, vector<128x128xf32>
    %1 = arith.truncf %0 : vector<128x128xf32> to vector<128x128xbf16>
    %c0_1 = arith.constant 0 : index
    %c0_2 = arith.constant 0 : index
    %2 = vector.load %arg2[%c0_1, %c0_2] : memref<128x128xbf16, #tpu.memory_space<vmem>>, vector<128x128xbf16>
    %cst = arith.constant dense<0.000000e+00> : vector<128x128xf32>
    %3 = tpu.matmul %1, %2, %cst {dimension_numbers = #tpu.dot_dimension_numbers<[1], [0], [0], [1], [0, 0, 1, 1], [], []>} : vector<128x128xbf16>, vector<128x128xbf16>, vector<128x128xf32> -> vector<128x128xf32>
    %c0_3 = arith.constant 0 : index
    %c0_4 = arith.constant 0 : index
    %4 = vector.load %arg3[%c0_3, %c0_4] : memref<1x128xf32, #tpu.memory_space<vmem>>, vector<1x128xf32>
    %5 = vector.broadcast %4 : vector<1x128xf32> to vector<128x128xf32>
    %6 = arith.addf %3, %5 : vector<128x128xf32>
    %cst_5 = arith.constant 0.000000e+00 : f32
    %7 = vector.broadcast %cst_5 : f32 to vector<128x128xf32>
    %8 = arith.maximumf %6, %7 : vector<128x128xf32>
    %9 = arith.truncf %8 : vector<128x128xf32> to vector<128x128xbf16>
    %c0_6 = arith.constant 0 : index
    %c0_7 = arith.constant 0 : index
    %10 = vector.load %arg4[%c0_6, %c0_7] : memref<128x128xbf16, #tpu.memory_space<vmem>>, vector<128x128xbf16>
    %cst_8 = arith.constant dense<0.000000e+00> : vector<128x128xf32>
    %11 = tpu.matmul %9, %10, %cst_8 {dimension_numbers = #tpu.dot_dimension_numbers<[1], [0], [0], [1], [0, 0, 1, 1], [], []>} : vector<128x128xbf16>, vector<128x128xbf16>, vector<128x128xf32> -> vector<128x128xf32>
    %c0_9 = arith.constant 0 : index
    %c0_10 = arith.constant 0 : index
    %12 = vector.load %arg5[%c0_9, %c0_10] : memref<1x128xf32, #tpu.memory_space<vmem>>, vector<1x128xf32>
    %13 = vector.broadcast %12 : vector<1x128xf32> to vector<128x128xf32>
    %14 = arith.addf %11, %13 : vector<128x128xf32>
    %cst_11 = arith.constant 0.000000e+00 : f32
    %15 = vector.broadcast %cst_11 : f32 to vector<128x128xf32>
    %16 = arith.maximumf %14, %15 : vector<128x128xf32>
    %17 = vector.extract_strided_slice %16 {offsets = [0, 0], sizes = [128, 2], strides = [1, 1]} : vector<128x128xf32> to vector<128x2xf32>
    %c0_12 = arith.constant 0 : index
    %c0_13 = arith.constant 0 : index
    %18 = vector.load %arg6[%c0_12, %c0_13] : memref<128x2xf32, #tpu.memory_space<vmem>>, vector<128x2xf32>
    tpu.vector_store %arg6[%c0_12, %c0_13], %17 {strides = array<i32>} : memref<128x2xf32, #tpu.memory_space<vmem>>, vector<128x2xf32>,
    return
  }
  func.func @transform_0(%arg0: i32) -> (i32, i32) {
    %c0_i32 = arith.constant 0 : i32
    %c0_i32_0 = arith.constant 0 : i32
    return %arg0, %c0_i32 : i32, i32
  }
  func.func @transform_1(%arg0: i32) -> (i32, i32) {
    %c0_i32 = arith.constant 0 : i32
    %c0_i32_0 = arith.constant 0 : i32
    %c0_i32_1 = arith.constant 0 : i32
    return %c0_i32, %c0_i32_0 : i32, i32
  }
  func.func @transform_2(%arg0: i32) -> (i32, i32) {
    %c0_i32 = arith.constant 0 : i32
    %c0_i32_0 = arith.constant 0 : i32
    %c0_i32_1 = arith.constant 0 : i32
    return %c0_i32, %c0_i32_0 : i32, i32
  }
  func.func @transform_3(%arg0: i32) -> (i32, i32) {
    %c0_i32 = arith.constant 0 : i32
    %c0_i32_0 = arith.constant 0 : i32
    %c0_i32_1 = arith.constant 0 : i32
    return %c0_i32, %c0_i32_0 : i32, i32
  }
  func.func @transform_4(%arg0: i32) -> (i32, i32) {
    %c0_i32 = arith.constant 0 : i32
    %c0_i32_0 = arith.constant 0 : i32
    %c0_i32_1 = arith.constant 0 : i32
    return %c0_i32, %c0_i32_0 : i32, i32
  }
  func.func @transform_5(%arg0: i32) -> (i32, i32) {
    %c0_i32 = arith.constant 0 : i32
    %c0_i32_0 = arith.constant 0 : i32
    return %arg0, %c0_i32 : i32, i32
  }
}

</mosaic_0001>

<bundles_post_ra>
// kernel: tpu_custom_call.1
= control target key start
LH: loop header
LB: loop body
LE: loop exit
PB: predicated region body
PF: predicated region fallthrough
CT: control target
= control target key end

     0   :  { %10 = vsyncpa [#allocation3], 0  ;;  %s1214_s0 = inlined_call_operand.hbm [shape: f32[256,128], index: 0, kind: input, shape index: {}]   ;;  %s1215_s1 = inlined_call_operand.hbm [shape: bf16[128,128], index: 1, kind: input, shape index: {}]   ;;  %s1216_s2 = inlined_call_operand.vmem [shape: f32[1,128], index: 2, kind: input, shape index: {}]   ;;  %s1217_s3 = inlined_call_operand.hbm [shape: bf16[128,128], index: 3, kind: input, shape index: {}]   ;;  %s1218_s4 = inlined_call_operand.vmem [shape: f32[1,128], index: 4, kind: input, shape index: {}]   ;;  %s1219_s5 = inlined_call_operand.vmem [shape: f32[256,2], index: 5, kind: output, shape index: {}]  }
   0x1   :  { %12 = vsyncpa [#allocation3 + $0x1], 0 }
   0x2   :  { %13 = vsyncpa [#allocation5], 0  ;;  %s1029_s18 = smov 0   ;;  %s1031_s19 = smov 0  }
   0x3   :  { %s1033_s20 = smov 0   ;;  %s1035_s21 = smov 0  }
   0x4 LB: > { %s683_s22 = sadd.s32 4294967295, %s991_s21   ;;  %p39_p0 = scmp.ne.s32.totalorder %s983_s19, %s979_s18  ;;  %s991_s21 = sphi %s1035_s21, %s1227_s21   ;;  %s987_s20 = sphi %s1033_s20, %s1226_s20   ;;  %s983_s19 = sphi %s1031_s19, %s1225_s19   ;;  %s979_s18 = sphi %s1029_s18, %s1224_s18  }
   0x5   : > { %p1051_p1 = scmp.eq.s32.totalorder %s683_s22, 0  ;;  %p685_p2 = scmp.ge.s32.totalorder %s991_s21, 1 }
   0x6   : > { %p160_p3 = scmp.lt.s32.totalorder %s991_s21, 3  ;;  %s171_s27 = sshll.u32 %s1215_s1, 4  ;;  %s172_s27 = int_to_ptr.hbm [resolvable:$true] %s171_s27 }
   0x7   : > { %p1059_p4 = por %p1051_p1, %p39_p0  ;;  %s993_s29 = smov [#allocation4]  }
   0x8   : > { %p1066_p5 = pnand %p685_p2, %p160_p3  ;;  %s173_s30 = sshll.u32 %s993_s29, 4  ;;  %s174_s30 = int_to_ptr.vmem [resolvable:$true] %s173_s30 }
   0x9   : > { %s188_s8 = sshll.u32 %s1217_s3, 4  ;;  %s994_s9 = smov 64   ;;  %s189_s8 = int_to_ptr.hbm [resolvable:$true] %s188_s8 }
   0xa   : > { %p807_p6 = pneg %p1066_p5  ;;  %s995_s10 = smov 4  }
   0xb   : > { %s996_s11 = smov [#allocation6]   ;;  %s1078_s13 = sadd.s32 1, %s991_s21  }
   0xc   : > { %p808_p7 = pnand %p807_p6, %p1051_p1  ;;  %s190_s12 = sshll.u32 %s996_s11, 4  ;;  %s191_s12 = int_to_ptr.vmem [resolvable:$true] %s190_s12 }
   0xd   : > { %s26_s14 = sadd.s32 1, %s987_s20  ;;  %s23_s15 = ssub.s32 %s991_s21, %s1078_s13 }
   0xe   : > { %810 = dma.hbm_to_vmem [thread:$0]  (!%p808_p7), %s172_s27, 1024, %s174_s30, [#allocation5], %s994_s9, %s994_s9, %s995_s10  }
   0xf   : > { %813 = dma.hbm_to_vmem [thread:$0]  (!%p808_p7), %s189_s8, 1024, %s191_s12, [#allocation5], %s994_s9, %s994_s9, %s995_s10  }
  0x10   : > { %p33_p8 = scmp.ne.s32.totalorder %s987_s20, %s983_s19  ;;  %p24_p9 = scmp.eq.s32.totalorder %s23_s15, 0 }
  0x11   : > { %p34_p10 = scmp.eq.s32.totalorder %s991_s21, 0  ;;  %p820_p11 = scmp.lt.s32.totalorder %s991_s21, 2 }
  0x12   : > { %s207_s16 = sand.u32 1, %s987_s20   ;;  %s764_s25 = sshll.u32 %s991_s21, 7 }
  0x13   : > { %s1089_s17 = scalar_select %p24_p9, %s987_s20, %s26_s14  }
  0x14   : > { %p35_p12 = por %p34_p10, %p33_p8  ;;  %s689_s18 = sshll.u32 %s207_s16, 7 }
  0x15   : > { %s216_s29 = scalar_lea.hbm %s1214_s0, %s764_s25  ;;  %s211_s6 = scalar_lea.vmem [#allocation2], %s689_s18 }
  0x16   : > { %s217_s30 = sshll.u32 %s216_s29, 4  ;;  %s219_s7 = sshll.u32 %s211_s6, 4  ;;  %s218_s30 = int_to_ptr.hbm [resolvable:$true] %s217_s30  ;;  %s220_s7 = int_to_ptr.vmem [resolvable:$true] %s219_s7 }
  0x17   : > { %p1095_p13 = pnand %p820_p11, %p35_p12  ;;  %s208_s9 = scalar_lea.sflag [#allocation3], %s207_s16 }
  0x18   : > { %s923_s10 = sshra.s32 %s218_s30, 4  ;;  %s930_s15 = scalar_lea.hbm %s1214_s0, 256  ;;  %s924_s10 = int_to_ptr.hbm [resolvable:$true] %s923_s10 }
  0x19   : > { %s925_s11 = scalar_lea.hbm %s924_s10, 128  ;;  %p927_p2 = pneg %p1095_p13 }
  0x1a   : > { %p926_p0 = scmp.ne.s32.totalorder %s924_s10, %s925_s11  ;;  %p931_p7 = scmp.lt.s32.totalorder %s924_s10, %s1214_s0 }
  0x1b   : > { %p932_p8 = scmp.lt.s32.totalorder %s930_s15, %s925_s11 }
  0x1c   : > { %p928_p3 = pnand %p927_p2, %p926_p0 }
  0x1d   : > { %p933_p9 = por %p932_p8, %p931_p7 }
  0x1e   : > { %p929_p6 = pneg %p928_p3 }
  0x20   : > { %p934_p10 = pnand %p933_p9, %p929_p6 }
  0x22   : > { %937 = shalt.err (!%p934_p10)
}
  0x23   : > { %s997_s16 = smov 128   ;;  %s998_s26 = smov 8  }
  0x24   : > { %817 = dma.hbm_to_vmem [thread:$0]  (!%p1095_p13), %s218_s30, 2048, %s220_s7, %s208_s9, %s997_s16, %s997_s16, %s998_s26  }
  0x25   : > { %231 = sbr.rel (%p1066_p5) target bundleno = 416 (0x1a0), region = 40  ;;  %s233_s27 = sand.u32 (!%p1066_p5), 1, %s983_s19  }
  0x26   : > { %s693_s29 = sshll.u32 (!%p1066_p5), %s233_s27, 7  ;;  %s234_s6 = scalar_lea.sflag (!%p1066_p5), [#allocation3], %s233_s27 }
  0x27   : > { %s1112_s12 = scalar_lea.vmem (!%p1066_p5), [#allocation2], %s693_s29 }
  0x2a   : > { %970 = dma.done.wait (%p1059_p4), %s234_s6, 2048  }
  0x2b   : > { %972 = vsyncadd (%p1059_p4), %s234_s6, 4294965248 }
  0x2c   : > { %974 = dma.done.wait (%p1051_p1), [#allocation5], 2048  }
  0x2d   : > { %976 = vsyncadd (%p1051_p1), [#allocation5], 4294965248  ;;  %v772_v0 = vld [vmem:[#allocation4 + $0x38] sm:$0xff]  ;;  %v771_v1 = vld [vmem:[#allocation4 + $0x30] sm:$0xff]  ;;  %s696_s28 = sshll.u32 %s683_s22, 4  ;;  %vm580_vm0 = vcmask 15360  }
  0x2e   : > { %374 = vmatpush.bf16.msra.mxu0 %v772_v0  ;;  %781 = vmatpush.bf16.msra.mxu2 %v772_v0  ;;  %v770_v2 = vld [vmem:[#allocation4 + $0x28] sm:$0xff]  ;;  %v769_v3 = vld [vmem:[#allocation4 + $0x20] sm:$0xff]  ;;  %v768_v4 = vld [vmem:[#allocation4 + $0x18] sm:$0xff]  ;;  %p277_p1 = scmp.lt.s32.totalorder %s696_s28, 31 }
  0x2f   : > { %v767_v5 = vld [vmem:[#allocation4 + $0x10] sm:$0xff]  ;;  %v766_v6 = vld [vmem:[#allocation4 + $0x8] sm:$0xff]  ;;  %v765_v7 = vld [vmem:[#allocation4] sm:$0xff] }
  0x30   : > { %v282_v8 = vld [vmem:[%s1112_s12] sm:$0xff]  ;;  %v283_v9 = vld [vmem:[%s1112_s12 + $0x8] sm:$0xff]  ;;  %v284_v14 = vld [vmem:[%s1112_s12 + $0x10] sm:$0xff]  ;;  %s1229_s28 = smov (!%p277_p1, %s696_s28), 31 }
  0x31   : > { %v290_v10 = vld [vmem:[%s1112_s12 + $0x40] sm:$0xff]  ;;  %v291_v11 = vld [vmem:[%s1112_s12 + $0x48] sm:$0xff]  ;;  %v298_v12 = vpack.c.bf16 %v283_v9, %v282_v8  ;;  %v285_v15 = vld [vmem:[%s1112_s12 + $0x18] sm:$0xff]  ;;  %s697_s8 = sshll.u32 %s1229_s28, 3 }
  0x32   : > { %375 = vmatpush.bf16.msra.mxu0 %v771_v1  ;;  %782 = vmatpush.bf16.msra.mxu2 %v771_v1  ;;  %v302_v13 = vpack.c.bf16 %v291_v11, %v290_v10  ;;  %v292_v16 = vld [vmem:[%s1112_s12 + $0x50] sm:$0xff]  ;;  %v293_v17 = vld [vmem:[%s1112_s12 + $0x58] sm:$0xff]  ;;  %v299_v18 = vpack.c.bf16 %v285_v15, %v284_v14  ;;  %v778_v22 = vld [vmem:[#allocation6 + $0x28] sm:$0xff]  ;;  %s1152_s11 = scalar_lea.vmem %s1219_s5, %s697_s8 }
  0x33   : > { %v303_v19 = vpack.c.bf16 %v293_v17, %v292_v16  ;;  %v780_v20 = vld [vmem:[#allocation6 + $0x38] sm:$0xff]  ;;  %v779_v21 = vld [vmem:[#allocation6 + $0x30] sm:$0xff]  ;;  %v286_v23 = vld [vmem:[%s1112_s12 + $0x20] sm:$0xff] }
  0x34   : > { %515 = vmatpush.bf16.msra.mxu1 %v780_v20  ;;  %789 = vmatpush.bf16.msra.mxu3 %v780_v20  ;;  %v287_v24 = vld [vmem:[%s1112_s12 + $0x28] sm:$0xff]  ;;  %v294_v25 = vld [vmem:[%s1112_s12 + $0x60] sm:$0xff]  ;;  %v288_v30 = vld [vmem:[%s1112_s12 + $0x30] sm:$0xff] }
  0x35   : > { %v295_v26 = vld [vmem:[%s1112_s12 + $0x68] sm:$0xff]  ;;  %v777_v27 = vld [vmem:[#allocation6 + $0x20] sm:$0xff]  ;;  %v300_v28 = vpack.c.bf16 %v287_v24, %v286_v23  ;;  %v289_v31 = vld [vmem:[%s1112_s12 + $0x38] sm:$0xff] }
  0x36   : > { %376 = vmatpush.bf16.msra.mxu0 %v770_v2  ;;  %783 = vmatpush.bf16.msra.mxu2 %v770_v2  ;;  %v304_v29 = vpack.c.bf16 %v295_v26, %v294_v25  ;;  %v296_v32 = vld [vmem:[%s1112_s12 + $0x70] sm:$0xff]  ;;  %v297_v33 = vld [vmem:[%s1112_s12 + $0x78] sm:$0xff]  ;;  %v301_v34 = vpack.c.bf16 %v289_v31, %v288_v30  ;;  %v774_v38 = vld [vmem:[#allocation6 + $0x8] sm:$0xff] }
  0x37   : > { %v305_v35 = vpack.c.bf16 %v297_v33, %v296_v32  ;;  %v776_v36 = vld [vmem:[#allocation6 + $0x18] sm:$0xff]  ;;  %v775_v37 = vld [vmem:[#allocation6 + $0x10] sm:$0xff]  ;;  %v773_v39 = vld [vmem:[#allocation6] sm:$0xff] }
  0x38   : > { %516 = vmatpush.bf16.msra.mxu1 %v779_v21  ;;  %790 = vmatpush.bf16.msra.mxu3 %v779_v21  ;;  %v861_v41 = vld [vmem:[%s1216_s2] ss:$0 sm:$0xff] }
  0x39   : > { %v1146_v33 = vld [vmem:[%s1218_s4] ss:$0 sm:$0xff] }
  0x3a   : > { %377 = vmatpush.bf16.msra.mxu0 %v769_v3  ;;  %784 = vmatpush.bf16.msra.mxu2 %v769_v3 }
  0x3c   : > { %517 = vmatpush.bf16.msra.mxu1 %v778_v22  ;;  %791 = vmatpush.bf16.msra.mxu3 %v778_v22 }
  0x3e   : > { %378 = vmatpush.bf16.msra.mxu0 %v768_v4  ;;  %785 = vmatpush.bf16.msra.mxu2 %v768_v4 }
  0x40   : > { %518 = vmatpush.bf16.msra.mxu1 %v777_v27  ;;  %792 = vmatpush.bf16.msra.mxu3 %v777_v27 }
  0x42   : > { %379 = vmatpush.bf16.msra.mxu0 %v767_v5  ;;  %786 = vmatpush.bf16.msra.mxu2 %v767_v5 }
  0x44   : > { %519 = vmatpush.bf16.msra.mxu1 %v776_v36  ;;  %793 = vmatpush.bf16.msra.mxu3 %v776_v36 }
  0x46   : > { %380 = vmatpush.bf16.msra.mxu0 %v766_v6  ;;  %787 = vmatpush.bf16.msra.mxu2 %v766_v6 }
  0x48   : > { %520 = vmatpush.bf16.msra.mxu1 %v775_v37  ;;  %794 = vmatpush.bf16.msra.mxu3 %v775_v37 }
  0x4a   : > { %381 = vmatpush.bf16.msra.mxu0 %v765_v7  ;;  %788 = vmatpush.bf16.msra.mxu2 %v765_v7 }
  0x4c   : > { %521 = vmatpush.bf16.msra.mxu1 %v774_v38  ;;  %795 = vmatpush.bf16.msra.mxu3 %v774_v38 }
  0x4d   : > { %382 = vmatmul.bf16.vlgmr.msra.gmra.mxu0 %v298_v12  ;;  %402 = vmatmul.bf16.vlgmr.msra.gmra.mxu2 %v302_v13 }
  0x50   : > { %522 = vmatpush.bf16.msra.mxu1 %v773_v39  ;;  %796 = vmatpush.bf16.msra.mxu3 %v773_v39 }
  0x5d   : > { %387 = vmatmul.bf16.gmra.mxu0 %v299_v18  ;;  %407 = vmatmul.bf16.gmra.mxu2 %v303_v19 }
  0x6d   : > { %392 = vmatmul.bf16.gmra.mxu0 %v300_v28  ;;  %412 = vmatmul.bf16.gmra.mxu2 %v304_v29 }
  0x7d   : > { %397 = vmatmul.bf16.gmra.mxu0 %v301_v34  ;;  %417 = vmatmul.bf16.gmra.mxu2 %v305_v35 }
  0xca   : > { %v383_v40 = vpop.f32.mrf.mxu0 }
  0xcb   : > { %v384_v42 = vadd.f32 %v861_v41, %v383_v40 }
  0xcd   : > { %v423_v45 = vmax.f32 %v384_v42, 0.0 }
  0xd0   : > { %v403_v43 = vpop.f32.mrf.mxu2 }
  0xd1   : > { %v404_v48 = vadd.f32 %v861_v41, %v403_v43 }
  0xd2   : > { %v385_v44 = vpop.f32.mrf.mxu0 }
  0xd3   : > { %v386_v46 = vadd.f32 %v861_v41, %v385_v44  ;;  %v431_v53 = vmax.f32 %v404_v48, 0.0 }
  0xd5   : > { %v424_v47 = vmax.f32 %v386_v46, 0.0 }
  0xd7   : > { %v439_v49 = vpack.c.bf16 %v424_v47, %v423_v45 }
  0xd8   : > { %v405_v50 = vpop.f32.mrf.mxu2 }
  0xd9   : > { %v406_v51 = vadd.f32 %v861_v41, %v405_v50  ;;  %523 = vmatmul.bf16.vlgmr.msra.gmra.mxu1 %v439_v49 }
  0xda   : > { %v388_v52 = vpop.f32.mrf.mxu0 }
  0xdb   : > { %v432_v54 = vmax.f32 %v406_v51, 0.0  ;;  %v389_v56 = vadd.f32 %v861_v41, %v388_v52 }
  0xdd   : > { %v443_v55 = vpack.c.bf16 %v432_v54, %v431_v53  ;;  %v425_v59 = vmax.f32 %v389_v56, 0.0 }
  0xdf   : > { %543 = vmatmul.bf16.vlgmr.msra.gmra.mxu3 %v443_v55 }
  0xe0   : > { %v408_v57 = vpop.f32.mrf.mxu2 }
  0xe1   : > { %v409_v62 = vadd.f32 %v861_v41, %v408_v57 }
  0xe2   : > { %v390_v58 = vpop.f32.mrf.mxu0 }
  0xe3   : > { %v391_v60 = vadd.f32 %v861_v41, %v390_v58  ;;  %v433_v3 = vmax.f32 %v409_v62, 0.0 }
  0xe5   : > { %v426_v61 = vmax.f32 %v391_v60, 0.0 }
  0xe7   : > { %v440_v63 = vpack.c.bf16 %v426_v61, %v425_v59 }
  0xe8   : > { %v410_v0 = vpop.f32.mrf.mxu2 }
  0xe9   : > { %v411_v1 = vadd.f32 %v861_v41, %v410_v0  ;;  %528 = vmatmul.bf16.gmra.mxu1 %v440_v63 }
  0xea   : > { %v393_v2 = vpop.f32.mrf.mxu0 }
  0xeb   : > { %v434_v4 = vmax.f32 %v411_v1, 0.0  ;;  %v394_v6 = vadd.f32 %v861_v41, %v393_v2 }
  0xed   : > { %v444_v5 = vpack.c.bf16 %v434_v4, %v433_v3  ;;  %v427_v9 = vmax.f32 %v394_v6, 0.0 }
  0xef   : > { %548 = vmatmul.bf16.gmra.mxu3 %v444_v5 }
  0xf0   : > { %v413_v7 = vpop.f32.mrf.mxu2 }
  0xf1   : > { %v414_v12 = vadd.f32 %v861_v41, %v413_v7 }
  0xf2   : > { %v395_v8 = vpop.f32.mrf.mxu0 }
  0xf3   : > { %v396_v10 = vadd.f32 %v861_v41, %v395_v8  ;;  %v435_v17 = vmax.f32 %v414_v12, 0.0 }
  0xf5   : > { %v428_v11 = vmax.f32 %v396_v10, 0.0 }
  0xf7   : > { %v441_v13 = vpack.c.bf16 %v428_v11, %v427_v9 }
  0xf8   : > { %v415_v14 = vpop.f32.mrf.mxu2 }
  0xf9   : > { %v416_v15 = vadd.f32 %v861_v41, %v415_v14  ;;  %533 = vmatmul.bf16.gmra.mxu1 %v441_v13 }
  0xfa   : > { %v398_v16 = vpop.f32.mrf.mxu0 }
  0xfb   : > { %v436_v18 = vmax.f32 %v416_v15, 0.0  ;;  %v399_v20 = vadd.f32 %v861_v41, %v398_v16 }
  0xfd   : > { %v445_v19 = vpack.c.bf16 %v436_v18, %v435_v17  ;;  %v429_v23 = vmax.f32 %v399_v20, 0.0 }
  0xff   : > { %553 = vmatmul.bf16.gmra.mxu3 %v445_v19 }
 0x100   : > { %v418_v21 = vpop.f32.mrf.mxu2 }
 0x101   : > { %v419_v26 = vadd.f32 %v861_v41, %v418_v21 }
 0x102   : > { %v400_v22 = vpop.f32.mrf.mxu0 }
 0x103   : > { %v401_v24 = vadd.f32 %v861_v41, %v400_v22  ;;  %v437_v30 = vmax.f32 %v419_v26, 0.0 }
 0x105   : > { %v430_v25 = vmax.f32 %v401_v24, 0.0 }
 0x107   : > { %v442_v27 = vpack.c.bf16 %v430_v25, %v429_v23 }
 0x108   : > { %v420_v28 = vpop.f32.mrf.mxu2 }
 0x109   : > { %v421_v29 = vadd.f32 %v861_v41, %v420_v28  ;;  %538 = vmatmul.bf16.gmra.mxu1 %v442_v27 }
 0x10b   : > { %v438_v31 = vmax.f32 %v421_v29, 0.0 }
 0x10d   : > { %v446_v32 = vpack.c.bf16 %v438_v31, %v437_v30 }
 0x10f   : > { %558 = vmatmul.bf16.gmra.mxu3 %v446_v32 }
 0x156   : > { %v524_v34 = vpop.f32.mrf.mxu1 }
 0x157   : > { %v525_v35 = vadd.f32 %v1146_v33, %v524_v34 }
 0x159   : > { %v564_v36 = vmax.f32 %v525_v35, 0.0 }
 0x15b   : > { %581 = vst.msk [vmem:[%s1152_s11] sm:$0xff] %vm580_vm0, %v564_v36 }
 0x15e   : > { %v526_v37 = vpop.f32.mrf.mxu1 }
 0x15f   : > { %v527_v38 = vadd.f32 %v1146_v33, %v526_v37 }
 0x161   : > { %v565_v39 = vmax.f32 %v527_v38, 0.0 }
 0x162   : > { %v544_v40 = vpop.f32.mrf.mxu3 }
 0x163   : > { %582 = vst.msk [vmem:[%s1152_s11 + $0x8] sm:$0xff] %vm580_vm0, %v565_v39  ;;  %v545_v41 = vadd.f32 %v1146_v33, %v544_v40 }
 0x165   : > { %v572_v42 = vmax.f32 %v545_v41, 0.0 }
 0x166   : > { %v529_v43 = vpop.f32.mrf.mxu1 }
 0x167   : > { %589 = vst.msk [vmem:[%s1152_s11 + $0x40] sm:$0xff] %vm580_vm0, %v572_v42  ;;  %v530_v44 = vadd.f32 %v1146_v33, %v529_v43 }
 0x169   : > { %v566_v45 = vmax.f32 %v530_v44, 0.0 }
 0x16a   : > { %v546_v46 = vpop.f32.mrf.mxu3 }
 0x16b   : > { %583 = vst.msk [vmem:[%s1152_s11 + $0x10] sm:$0xff] %vm580_vm0, %v566_v45  ;;  %v547_v47 = vadd.f32 %v1146_v33, %v546_v46 }
 0x16d   : > { %v573_v48 = vmax.f32 %v547_v47, 0.0 }
 0x16e   : > { %v531_v49 = vpop.f32.mrf.mxu1 }
 0x16f   : > { %590 = vst.msk [vmem:[%s1152_s11 + $0x48] sm:$0xff] %vm580_vm0, %v573_v48  ;;  %v532_v50 = vadd.f32 %v1146_v33, %v531_v49 }
 0x171   : > { %v567_v51 = vmax.f32 %v532_v50, 0.0 }
 0x172   : > { %v549_v52 = vpop.f32.mrf.mxu3 }
 0x173   : > { %584 = vst.msk [vmem:[%s1152_s11 + $0x18] sm:$0xff] %vm580_vm0, %v567_v51  ;;  %v550_v53 = vadd.f32 %v1146_v33, %v549_v52 }
 0x175   : > { %v574_v54 = vmax.f32 %v550_v53, 0.0 }
 0x176   : > { %v534_v55 = vpop.f32.mrf.mxu1 }
 0x177   : > { %591 = vst.msk [vmem:[%s1152_s11 + $0x50] sm:$0xff] %vm580_vm0, %v574_v54  ;;  %v535_v56 = vadd.f32 %v1146_v33, %v534_v55 }
 0x179   : > { %v568_v57 = vmax.f32 %v535_v56, 0.0 }
 0x17a   : > { %v551_v58 = vpop.f32.mrf.mxu3 }
 0x17b   : > { %585 = vst.msk [vmem:[%s1152_s11 + $0x20] sm:$0xff] %vm580_vm0, %v568_v57  ;;  %v552_v59 = vadd.f32 %v1146_v33, %v551_v58 }
 0x17d   : > { %v575_v60 = vmax.f32 %v552_v59, 0.0 }
 0x17e   : > { %v536_v61 = vpop.f32.mrf.mxu1 }
 0x17f   : > { %592 = vst.msk [vmem:[%s1152_s11 + $0x58] sm:$0xff] %vm580_vm0, %v575_v60  ;;  %v537_v62 = vadd.f32 %v1146_v33, %v536_v61 }
 0x181   : > { %v569_v63 = vmax.f32 %v537_v62, 0.0 }
 0x182   : > { %v554_v0 = vpop.f32.mrf.mxu3 }
 0x183   : > { %586 = vst.msk [vmem:[%s1152_s11 + $0x28] sm:$0xff] %vm580_vm0, %v569_v63  ;;  %v555_v1 = vadd.f32 %v1146_v33, %v554_v0 }
 0x185   : > { %v576_v2 = vmax.f32 %v555_v1, 0.0 }
 0x186   : > { %v539_v3 = vpop.f32.mrf.mxu1 }
 0x187   : > { %593 = vst.msk [vmem:[%s1152_s11 + $0x60] sm:$0xff] %vm580_vm0, %v576_v2  ;;  %v540_v4 = vadd.f32 %v1146_v33, %v539_v3 }
 0x189   : > { %v570_v5 = vmax.f32 %v540_v4, 0.0 }
 0x18a   : > { %v556_v6 = vpop.f32.mrf.mxu3 }
 0x18b   : > { %587 = vst.msk [vmem:[%s1152_s11 + $0x30] sm:$0xff] %vm580_vm0, %v570_v5  ;;  %v557_v7 = vadd.f32 %v1146_v33, %v556_v6 }
 0x18d   : > { %v577_v8 = vmax.f32 %v557_v7, 0.0 }
 0x18e   : > { %v541_v9 = vpop.f32.mrf.mxu1 }
 0x18f   : > { %594 = vst.msk [vmem:[%s1152_s11 + $0x68] sm:$0xff] %vm580_vm0, %v577_v8  ;;  %v542_v10 = vadd.f32 %v1146_v33, %v541_v9 }
 0x191   : > { %v571_v11 = vmax.f32 %v542_v10, 0.0 }
 0x192   : > { %v559_v12 = vpop.f32.mrf.mxu3 }
 0x193   : > { %588 = vst.msk [vmem:[%s1152_s11 + $0x38] sm:$0xff] %vm580_vm0, %v571_v11  ;;  %v560_v13 = vadd.f32 %v1146_v33, %v559_v12 }
 0x195   : > { %v578_v14 = vmax.f32 %v560_v13, 0.0 }
 0x197   : > { %595 = vst.msk [vmem:[%s1152_s11 + $0x70] sm:$0xff] %vm580_vm0, %v578_v14 }
 0x19a   : > { %v561_v15 = vpop.f32.mrf.mxu3 }
 0x19b   : > { %v562_v16 = vadd.f32 %v1146_v33, %v561_v15 }
 0x19d   : > { %v579_v17 = vmax.f32 %v562_v16, 0.0 }
 0x19f   : > { %596 = vst.msk [vmem:[%s1152_s11 + $0x78] sm:$0xff] %vm580_vm0, %v579_v17 }
 0x1a0 PF: > { %p16_p4 = scmp.ge.s32.totalorder %s1078_s13, 4   ;;  %s1224_s18 = smov %s983_s19 }
 0x1a1   : > { %s1225_s19 = smov %s987_s20  ;;  %s1226_s20 = smov %s1089_s17 }
 0x1a2   : > { %s1227_s21 = smov %s1078_s13  ;;  %18 = sbr.rel (!%p16_p4) target bundleno = 4 (0x4), region = 88 }
 0x1a7   :  { %619 = vsyncpa [#allocation3], 1 }
 0x1a8   :  { %621 = vsyncpa [#allocation3 + $0x1], 1 }
 0x1a9   :  { %622 = vsyncpa [#allocation5], 1 }

</bundles_post_ra>
